<compile_context>
chip_gen: v6e
topology: v6e:2x2x1
jax: 0.10.0
libtpu: 0.0.40
codegen_flags: <defaults>
</compile_context>

<pallas_src>
import functools

import jax
import jax.numpy as jnp
import numpy as np
from jax import lax
from jax.experimental import pallas as pl
from jax.experimental.pallas import tpu as pltpu

LRELU_SLOPE = 0.2
BN_EPS = 1e-5
VMEM_LIMIT_BYTES = 48 * 1024 * 1024  # safe on v5e/v6e (128 MiB) and v7x (64 MiB)


def _lrelu(x):
    # LeakyReLU(0.2): max(x, 0.2*x)
    return jnp.maximum(x, LRELU_SLOPE * x)


def _round_up(a, m):
    return (a + m - 1) // m * m


def _gram(a):
    # a: [C, T] -> a @ a.T (contract the lane dim of both operands; MXU).
    return lax.dot_general(a, a, (((1,), (1,)), ((), ())),
                           preferred_element_type=jnp.float32)


# ---------------------------------------------------------------------------
# Call A: BatchNorm batch statistics (via Gram matrices on the MXU) ->
# folded per-channel scale/shift per BN layer.
# Kernel args: inputs (x tile + weights), outputs (sc2, sh2, sc3, sh3),
# scratch (Gram/sum accumulators + folded w2).
# ---------------------------------------------------------------------------
def stats_kernel(dhw, npad, inv_p,
                 x_ref, w1, b1, w2, g2, be2, w3, g3, be3,
                 sc2, sh2, sc3, sh3,
                 g1_acc, s1_acc, g2_acc, s2_acc, w2s):
    ph = pl.program_id(0)        # 0: BN#1 stats, 1: BN#2 stats
    i = pl.program_id(1)         # sample
    t = pl.program_id(2)         # pixel tile within the sample
    is_first = jnp.logical_and(i == 0, t == 0)
    is_last = jnp.logical_and(i == pl.num_programs(1) - 1,
                              t == pl.num_programs(2) - 1)

    x = x_ref[...]                                            # [1, TILE]
    if npad:
        # Only the 1-channel input is masked (3 ops/pixel); the resulting
        # constant pad-column contribution is removed analytically at the fold.
        lane = jax.lax.broadcasted_iota(jnp.int32, x.shape, 1) + t * x.shape[1]
        x = jnp.where(lane < dhw, x, 0.0)
    a1 = _lrelu(w1[...] * x + b1[...])                        # [ndf, TILE]

    @pl.when(ph == 0)
    def _():
        @pl.when(is_first)
        def _():
            g1_acc[...] = jnp.zeros_like(g1_acc)
            s1_acc[...] = jnp.zeros_like(s1_acc)

        g1_acc[...] += _gram(a1)                              # MXU
        s1_acc[...] += jnp.sum(a1, axis=1, keepdims=True)

        @pl.when(is_last)
        def _():
            s1 = s1_acc[...]
            g1 = g1_acc[...]
            if npad:  # padded x columns are exactly 0 -> a1 column = lrelu(b1)
                a1p = _lrelu(b1[...])                         # [ndf, 1]
                s1 = s1 - npad * a1p
                g1 = g1 - npad * _gram(a1p)
            # b2 dropped: a constant per-channel bias cancels in training BN.
            sum_h2 = jnp.dot(w2[...], s1, preferred_element_type=jnp.float32)
            sq_h2 = jnp.sum(
                jnp.dot(w2[...], g1, preferred_element_type=jnp.float32)
                * w2[...], axis=1, keepdims=True)
            mean = sum_h2 * inv_p
            var = jnp.maximum(sq_h2 * inv_p - mean * mean, 0.0)
            scale = jax.lax.rsqrt(var + BN_EPS) * g2[...]
            sc2[...] = scale
            sh2[...] = be2[...] - mean * scale
            w2s[...] = w2[...] * scale          # fold BN#1 scale into conv2

    @pl.when(ph == 1)
    def _():
        @pl.when(is_first)
        def _():
            g2_acc[...] = jnp.zeros_like(g2_acc)
            s2_acc[...] = jnp.zeros_like(s2_acc)

        # BN#1 scale already folded into w2s; only the shift remains.
        a2 = _lrelu(jnp.dot(w2s[...], a1, preferred_element_type=jnp.float32)
                    + sh2[...])                               # [c2, TILE]
        g2_acc[...] += _gram(a2)                              # MXU
        s2_acc[...] += jnp.sum(a2, axis=1, keepdims=True)

        @pl.when(is_last)
        def _():
            s2 = s2_acc[...]
            g2v = g2_acc[...]
            if npad:
                a1p = _lrelu(b1[...])
                a2p = _lrelu(
                    jnp.dot(w2s[...], a1p, preferred_element_type=jnp.float32)
                    + sh2[...])
                s2 = s2 - npad * a2p
                g2v = g2v - npad * _gram(a2p)
            sum_h3 = jnp.dot(w3[...], s2, preferred_element_type=jnp.float32)
            sq_h3 = jnp.sum(
                jnp.dot(w3[...], g2v, preferred_element_type=jnp.float32)
                * w3[...], axis=1, keepdims=True)
            mean = sum_h3 * inv_p
            var = jnp.maximum(sq_h3 * inv_p - mean * mean, 0.0)
            scale = jax.lax.rsqrt(var + BN_EPS) * g3[...]
            sc3[...] = scale
            sh3[...] = be3[...] - mean * scale


# ---------------------------------------------------------------------------
# Call B: apply the full per-voxel MLP.  BN scales are pre-folded into the
# conv weights (wrapper), so each BN is a single per-channel add here.
# No cross-tile dependency -> grid is fully "parallel" (megacore-friendly).
# ---------------------------------------------------------------------------
def apply_kernel(x_ref, w1, b1, w2f, w3f, w4, b4, sh2, sh3, out_ref):
    a1 = _lrelu(w1[...] * x_ref[...] + b1[...])
    a2 = _lrelu(jnp.dot(w2f[...], a1, preferred_element_type=jnp.float32)
                + sh2[...])
    a3 = _lrelu(jnp.dot(w3f[...], a2, preferred_element_type=jnp.float32)
                + sh3[...])
    out_ref[...] = (jnp.dot(w4[...], a3, preferred_element_type=jnp.float32)
                    + b4[...])


def pixel_discriminator_forward(x, params, *, tile_p=32768):
    """x: [N, 1, D, H, W] float32 (PyTorch NCDHW, model input channel is 1)."""
    n, c_in, d, h, w = x.shape
    assert c_in == 1, "first Conv3d in the module has in_channels = 1"
    dhw = d * h * w
    p = n * dhw

    (w1, b1, w2, b2, g2, be2, w3, b3, g3, be3, w4, b4) = params
    del b2, b3  # constant per-channel biases cancel in training-mode BN
    ndf = w1.shape[0]
    c2, c3, c_out = 2 * ndf, 4 * ndf, w4.shape[0]

    # Lane-dense per-sample tiling of the D*H*W pixel axis.  The last tile of
    # each sample may be partial: the stats kernel masks the (1-channel) input
    # and corrects analytically; the apply kernel's out-of-range writes are
    # simply dropped by Pallas.  No jnp.pad copy and no output slicing.
    tile = _round_up(min(int(tile_p), _round_up(dhw, 128)), 128)
    nt = pl.cdiv(dhw, tile)
    npad = n * (nt * tile - dhw)
    inv_p = 1.0 / float(p)

    x3 = x.reshape(n, 1, dhw)        # metadata-only reshape (C == 1)

    # ---- Call A: BN batch statistics -> folded scale/shift -----------------
    def cspec3(arr):
        return pl.BlockSpec(arr.shape, lambda ph, i, t: (0, 0))

    stats_weights = (w1, b1, w2, g2, be2, w3, g3, be3)
    stats_in_specs = (
        [pl.BlockSpec((pl.Squeezed(), 1, tile), lambda ph, i, t: (i, 0, t))]
        + [cspec3(a) for a in stats_weights])
    stats_out_shapes = (jax.ShapeDtypeStruct((c2, 1), jnp.float32),
                        jax.ShapeDtypeStruct((c2, 1), jnp.float32),
                        jax.ShapeDtypeStruct((c3, 1), jnp.float32),
                        jax.ShapeDtypeStruct((c3, 1), jnp.float32))
    stats_out_specs = [pl.BlockSpec(s.shape, lambda ph, i, t: (0, 0))
                       for s in stats_out_shapes]

    sc2, sh2, sc3, sh3 = pl.pallas_call(
        functools.partial(stats_kernel, dhw, float(npad), inv_p),
        out_shape=stats_out_shapes,
        grid_spec=pltpu.PrefetchScalarGridSpec(
            num_scalar_prefetch=0,
            grid=(2, n, nt),
            in_specs=stats_in_specs,
            out_specs=stats_out_specs,
            scratch_shapes=[pltpu.VMEM((ndf, ndf), jnp.float32),  # G1
                            pltpu.VMEM((ndf, 1), jnp.float32),    # s1
                            pltpu.VMEM((c2, c2), jnp.float32),    # G2
                            pltpu.VMEM((c2, 1), jnp.float32),     # s2
                            pltpu.VMEM((c2, ndf), jnp.float32)]), # w2*scale
        compiler_params=pltpu.CompilerParams(
            dimension_semantics=("arbitrary", "arbitrary", "arbitrary"),
            vmem_limit_bytes=VMEM_LIMIT_BYTES),
    )(x3, *stats_weights)

    # Pre-fold the BN scales into the conv weights (tiny XLA ops); only the
    # per-channel shifts remain as in-kernel adds in the apply pass.
    w2f = w2 * sc2
    w3f = w3 * sc3

    # ---- Call B: apply the full per-voxel MLP -------------------------------
    def cspec2(arr):
        return pl.BlockSpec(arr.shape, lambda i, t: (0, 0))

    apply_weights = (w1, b1, w2f, w3f, w4, b4, sh2, sh3)
    apply_in_specs = (
        [pl.BlockSpec((pl.Squeezed(), 1, tile), lambda i, t: (i, 0, t))]
        + [cspec2(a) for a in apply_weights])

    out = pl.pallas_call(
        apply_kernel,
        out_shape=jax.ShapeDtypeStruct((n, c_out, dhw), jnp.float32),
        grid_spec=pltpu.PrefetchScalarGridSpec(
            num_scalar_prefetch=0,
            grid=(n, nt),
            in_specs=apply_in_specs,
            out_specs=pl.BlockSpec((pl.Squeezed(), c_out, tile),
                                   lambda i, t: (i, 0, t))),
        compiler_params=pltpu.CompilerParams(
            dimension_semantics=("parallel", "parallel"),
            vmem_limit_bytes=VMEM_LIMIT_BYTES),
    )(x3, *apply_weights)

    # [N, C_out, D*H*W] -> [N, C_out, D, H, W]: metadata-only (no transpose).
    return out.reshape(n, c_out, d, h, w)


# ---------------------------------------------------------------------------
# Pure-JAX reference of the PyTorch forward (training-mode BatchNorm).
# Reference matmuls run at HIGHEST precision so it tracks true f32 semantics.
# ---------------------------------------------------------------------------
def reference_forward(x, params):
    (w1, b1, w2, b2, g2, be2, w3, b3, g3, be3, w4, b4) = params
    n, _, d, h, w_ = x.shape
    xf = x.reshape(1, -1)

    def mm(a, b):
        return jnp.dot(a, b, precision=jax.lax.Precision.HIGHEST)

    def bn(hh, g, b):
        mean = hh.mean(axis=1, keepdims=True)
        var = ((hh - mean) ** 2).mean(axis=1, keepdims=True)
        return (hh - mean) / jnp.sqrt(var + BN_EPS) * g + b

    a1 = _lrelu(mm(w1, xf) + b1)
    a2 = _lrelu(bn(mm(w2, a1) + b2, g2, be2))
    a3 = _lrelu(bn(mm(w3, a2) + b3, g3, be3))
    o = mm(w4, a3) + b4
    c_out = w4.shape[0]
    return o.reshape(c_out, n, d, h, w_).transpose(1, 0, 2, 3, 4)


def make_params(key, ndf, img_channel):
    """Deterministic init matching the module's parameter shapes.
    Conv weights/biases ~ U(-1/sqrt(fan_in), 1/sqrt(fan_in)); BN gamma=1,
    beta=0 (PyTorch defaults)."""
    def conv_params(k, c_out, c_in):
        kw, kb = jax.random.split(k)
        bound = 1.0 / np.sqrt(c_in)
        w = jax.random.uniform(kw, (c_out, c_in), jnp.float32, -bound, bound)
        b = jax.random.uniform(kb, (c_out, 1), jnp.float32, -bound, bound)
        return w, b

    k1, k2, k3, k4 = jax.random.split(key, 4)
    w1, b1 = conv_params(k1, ndf, 1)
    w2, b2 = conv_params(k2, 2 * ndf, ndf)
    w3, b3 = conv_params(k3, 4 * ndf, 2 * ndf)
    w4, b4 = conv_params(k4, img_channel, 4 * ndf)
    g2 = jnp.ones((2 * ndf, 1), jnp.float32)
    be2 = jnp.zeros((2 * ndf, 1), jnp.float32)
    g3 = jnp.ones((4 * ndf, 1), jnp.float32)
    be3 = jnp.zeros((4 * ndf, 1), jnp.float32)
    return (w1, b1, w2, b2, g2, be2, w3, b3, g3, be3, w4, b4)


if __name__ == "__main__":
    key = jax.random.PRNGKey(0)
    kx1, kx2, kp = jax.random.split(key, 3)

    ndf, img_channel = 8, 3
    params = make_params(kp, ndf, img_channel)

    # Tolerance leaves room for reduced-precision (bf16-pass) f32 MXU matmuls
    # inside the kernel vs. the HIGHEST-precision reference.
    RTOL = ATOL = 5e-3

    # Test 1: single lane-dense tile per sample, DHW divisible by 128.
    N, D, H, W = 2, 8, 8, 8
    x1 = jax.random.normal(kx1, (N, 1, D, H, W), jnp.float32)
    out1 = jax.block_until_ready(pixel_discriminator_forward(x1, params))
    ref1 = reference_forward(x1, params)
    assert out1.shape == (N, img_channel, D, H, W)
    np.testing.assert_allclose(np.asarray(out1), np.asarray(ref1),
                               rtol=RTOL, atol=ATOL)

    # Test 2: multi-tile path with a partial last tile (masked input +
    # analytic pad correction in the stats pass, clipped writes in apply).
    N2, D2, H2, W2 = 2, 12, 12, 12          # DHW = 1728, not a tile multiple
    x2 = jax.random.normal(kx2, (N2, 1, D2, H2, W2), jnp.float32)
    out2 = jax.block_until_ready(
        pixel_discriminator_forward(x2, params, tile_p=1024))
    ref2 = reference_forward(x2, params)
    assert out2.shape == (N2, img_channel, D2, H2, W2)
    np.testing.assert_allclose(np.asarray(out2), np.asarray(ref2),
                               rtol=RTOL, atol=ATOL)

    print("KERNEL_OK")
</pallas_src>

<mosaic_0001>
module attributes {stable_mosaic.version = 11 : i64} {
  func.func @stats_kernel(%arg0: i32, %arg1: i32, %arg2: i32, %arg3: memref<1x1x512xf32, #tpu.memory_space<vmem>>, %arg4: memref<8x1xf32, #tpu.memory_space<vmem>>, %arg5: memref<8x1xf32, #tpu.memory_space<vmem>>, %arg6: memref<16x8xf32, #tpu.memory_space<vmem>>, %arg7: memref<16x1xf32, #tpu.memory_space<vmem>>, %arg8: memref<16x1xf32, #tpu.memory_space<vmem>>, %arg9: memref<32x16xf32, #tpu.memory_space<vmem>>, %arg10: memref<32x1xf32, #tpu.memory_space<vmem>>, %arg11: memref<32x1xf32, #tpu.memory_space<vmem>>, %arg12: memref<16x1xf32, #tpu.memory_space<vmem>>, %arg13: memref<16x1xf32, #tpu.memory_space<vmem>>, %arg14: memref<32x1xf32, #tpu.memory_space<vmem>>, %arg15: memref<32x1xf32, #tpu.memory_space<vmem>>, %arg16: memref<8x8xf32, #tpu.memory_space<vmem>>, %arg17: memref<8x1xf32, #tpu.memory_space<vmem>>, %arg18: memref<16x16xf32, #tpu.memory_space<vmem>>, %arg19: memref<16x1xf32, #tpu.memory_space<vmem>>, %arg20: memref<16x8xf32, #tpu.memory_space<vmem>>) attributes {dimension_semantics = [#tpu.dimension_semantics<arbitrary>, #tpu.dimension_semantics<arbitrary>, #tpu.dimension_semantics<arbitrary>], iteration_bounds = array<i64: 2, 2, 1>, scalar_prefetch = 0 : i64, scratch_operands = 5 : i64, tpu.core_type = #tpu.core_type<tc>, window_params = [{transform_indices = @transform_0, window_bounds = array<i64: 1, 1, 512>}, {pipeline_mode = #tpu.pipeline_mode<synchronous>, transform_indices = @transform_1, window_bounds = array<i64: 8, 1>}, {pipeline_mode = #tpu.pipeline_mode<synchronous>, transform_indices = @transform_2, window_bounds = array<i64: 8, 1>}, {pipeline_mode = #tpu.pipeline_mode<synchronous>, transform_indices = @transform_3, window_bounds = array<i64: 16, 8>}, {pipeline_mode = #tpu.pipeline_mode<synchronous>, transform_indices = @transform_4, window_bounds = array<i64: 16, 1>}, {pipeline_mode = #tpu.pipeline_mode<synchronous>, transform_indices = @transform_5, window_bounds = array<i64: 16, 1>}, {pipeline_mode = #tpu.pipeline_mode<synchronous>, transform_indices = @transform_6, window_bounds = array<i64: 32, 16>}, {pipeline_mode = #tpu.pipeline_mode<synchronous>, transform_indices = @transform_7, window_bounds = array<i64: 32, 1>}, {pipeline_mode = #tpu.pipeline_mode<synchronous>, transform_indices = @transform_8, window_bounds = array<i64: 32, 1>}, {pipeline_mode = #tpu.pipeline_mode<synchronous>, transform_indices = @transform_9, window_bounds = array<i64: 16, 1>}, {pipeline_mode = #tpu.pipeline_mode<synchronous>, transform_indices = @transform_10, window_bounds = array<i64: 16, 1>}, {pipeline_mode = #tpu.pipeline_mode<synchronous>, transform_indices = @transform_11, window_bounds = array<i64: 32, 1>}, {pipeline_mode = #tpu.pipeline_mode<synchronous>, transform_indices = @transform_12, window_bounds = array<i64: 32, 1>}]} {
    %c0_i32 = arith.constant 0 : i32
    %0 = arith.cmpi eq, %arg1, %c0_i32 : i32
    %c0_i32_0 = arith.constant 0 : i32
    %1 = arith.cmpi eq, %arg2, %c0_i32_0 : i32
    %2 = arith.andi %0, %1 : i1
    %c1_i32 = arith.constant 1 : i32
    %3 = arith.cmpi eq, %arg1, %c1_i32 : i32
    %c0_i32_1 = arith.constant 0 : i32
    %4 = arith.cmpi eq, %arg2, %c0_i32_1 : i32
    %5 = arith.andi %3, %4 : i1
    %c0 = arith.constant 0 : index
    %c0_2 = arith.constant 0 : index
    %c0_3 = arith.constant 0 : index
    %6 = vector.load %arg3[%c0, %c0_2, %c0_3] : memref<1x1x512xf32, #tpu.memory_space<vmem>>, vector<1x1x512xf32>
    %7 = vector.shape_cast %6 : vector<1x1x512xf32> to vector<1x512xf32>
    %c0_4 = arith.constant 0 : index
    %c0_5 = arith.constant 0 : index
    %8 = vector.load %arg4[%c0_4, %c0_5] : memref<8x1xf32, #tpu.memory_space<vmem>>, vector<8x1xf32>
    %9 = vector.broadcast %8 : vector<8x1xf32> to vector<8x512xf32>
    %10 = vector.broadcast %7 : vector<1x512xf32> to vector<8x512xf32>
    %11 = arith.mulf %9, %10 : vector<8x512xf32>
    %c0_6 = arith.constant 0 : index
    %c0_7 = arith.constant 0 : index
    %12 = vector.load %arg5[%c0_6, %c0_7] : memref<8x1xf32, #tpu.memory_space<vmem>>, vector<8x1xf32>
    %13 = vector.broadcast %12 : vector<8x1xf32> to vector<8x512xf32>
    %14 = arith.addf %11, %13 : vector<8x512xf32>
    %cst = arith.constant 2.000000e-01 : f32
    %15 = vector.broadcast %cst : f32 to vector<8x512xf32>
    %16 = arith.mulf %15, %14 : vector<8x512xf32>
    %17 = arith.maximumf %14, %16 : vector<8x512xf32>
    %c0_i32_8 = arith.constant 0 : i32
    %18 = arith.cmpi eq, %arg0, %c0_i32_8 : i32
    %19 = arith.extui %18 : i1 to i32
    %c0_i32_9 = arith.constant 0 : i32
    %20 = arith.cmpi ne, %19, %c0_i32_9 : i32
    scf.if %20 {
      %24 = arith.extui %2 : i1 to i32
      %c0_i32_12 = arith.constant 0 : i32
      %25 = arith.cmpi ne, %24, %c0_i32_12 : i32
      scf.if %25 {
        %cst_24 = arith.constant 0.000000e+00 : f32
        %37 = vector.broadcast %cst_24 : f32 to vector<8x8xf32>
        %c0_25 = arith.constant 0 : index
        %c0_26 = arith.constant 0 : index
        %38 = vector.load %arg16[%c0_25, %c0_26] : memref<8x8xf32, #tpu.memory_space<vmem>>, vector<8x8xf32>
        tpu.vector_store %arg16[%c0_25, %c0_26], %37 {strides = array<i32>} : memref<8x8xf32, #tpu.memory_space<vmem>>, vector<8x8xf32>,
        %cst_27 = arith.constant 0.000000e+00 : f32
        %39 = vector.broadcast %cst_27 : f32 to vector<8x1xf32>
        %c0_28 = arith.constant 0 : index
        %c0_29 = arith.constant 0 : index
        %40 = vector.load %arg17[%c0_28, %c0_29] : memref<8x1xf32, #tpu.memory_space<vmem>>, vector<8x1xf32>
        tpu.vector_store %arg17[%c0_28, %c0_29], %39 {strides = array<i32>} : memref<8x1xf32, #tpu.memory_space<vmem>>, vector<8x1xf32>,
      } else {
      }
      %c0_13 = arith.constant 0 : index
      %c0_14 = arith.constant 0 : index
      %26 = vector.load %arg16[%c0_13, %c0_14] : memref<8x8xf32, #tpu.memory_space<vmem>>, vector<8x8xf32>
      %cst_15 = arith.constant dense<0.000000e+00> : vector<8x8xf32>
      %27 = tpu.matmul %17, %17, %cst_15 {dimension_numbers = #tpu.dot_dimension_numbers<[1], [1], [0], [0], [0, 0, 1, 0], [], []>} : vector<8x512xf32>, vector<8x512xf32>, vector<8x8xf32> -> vector<8x8xf32>
      %28 = arith.addf %26, %27 : vector<8x8xf32>
      %c0_16 = arith.constant 0 : index
      %c0_17 = arith.constant 0 : index
      %29 = vector.load %arg16[%c0_16, %c0_17] : memref<8x8xf32, #tpu.memory_space<vmem>>, vector<8x8xf32>
      tpu.vector_store %arg16[%c0_16, %c0_17], %28 {strides = array<i32>} : memref<8x8xf32, #tpu.memory_space<vmem>>, vector<8x8xf32>,
      %c0_18 = arith.constant 0 : index
      %c0_19 = arith.constant 0 : index
      %30 = vector.load %arg17[%c0_18, %c0_19] : memref<8x1xf32, #tpu.memory_space<vmem>>, vector<8x1xf32>
      %cst_20 = arith.constant dense<0.000000e+00> : vector<8xf32>
      %31 = vector.multi_reduction <add>, %17, %cst_20 [1] : vector<8x512xf32> to vector<8xf32>
      %32 = vector.shape_cast %31 : vector<8xf32> to vector<8x1xf32>
      %33 = arith.addf %30, %32 : vector<8x1xf32>
      %c0_21 = arith.constant 0 : index
      %c0_22 = arith.constant 0 : index
      %34 = vector.load %arg17[%c0_21, %c0_22] : memref<8x1xf32, #tpu.memory_space<vmem>>, vector<8x1xf32>
      tpu.vector_store %arg17[%c0_21, %c0_22], %33 {strides = array<i32>} : memref<8x1xf32, #tpu.memory_space<vmem>>, vector<8x1xf32>,
      %35 = arith.extui %5 : i1 to i32
      %c0_i32_23 = arith.constant 0 : i32
      %36 = arith.cmpi ne, %35, %c0_i32_23 : i32
      scf.if %36 {
        %c0_24 = arith.constant 0 : index
        %c0_25 = arith.constant 0 : index
        %37 = vector.load %arg17[%c0_24, %c0_25] : memref<8x1xf32, #tpu.memory_space<vmem>>, vector<8x1xf32>
        %c0_26 = arith.constant 0 : index
        %c0_27 = arith.constant 0 : index
        %38 = vector.load %arg16[%c0_26, %c0_27] : memref<8x8xf32, #tpu.memory_space<vmem>>, vector<8x8xf32>
        %c0_28 = arith.constant 0 : index
        %c0_29 = arith.constant 0 : index
        %39 = vector.load %arg6[%c0_28, %c0_29] : memref<16x8xf32, #tpu.memory_space<vmem>>, vector<16x8xf32>
        %cst_30 = arith.constant dense<0.000000e+00> : vector<16x1xf32>
        %40 = tpu.matmul %39, %37, %cst_30 {dimension_numbers = #tpu.dot_dimension_numbers<[1], [0], [0], [1], [0, 0, 1, 1], [], []>} : vector<16x8xf32>, vector<8x1xf32>, vector<16x1xf32> -> vector<16x1xf32>
        %c0_31 = arith.constant 0 : index
        %c0_32 = arith.constant 0 : index
        %41 = vector.load %arg6[%c0_31, %c0_32] : memref<16x8xf32, #tpu.memory_space<vmem>>, vector<16x8xf32>
        %cst_33 = arith.constant dense<0.000000e+00> : vector<16x8xf32>
        %42 = tpu.matmul %41, %38, %cst_33 {dimension_numbers = #tpu.dot_dimension_numbers<[1], [0], [0], [1], [0, 0, 1, 1], [], []>} : vector<16x8xf32>, vector<8x8xf32>, vector<16x8xf32> -> vector<16x8xf32>
        %c0_34 = arith.constant 0 : index
        %c0_35 = arith.constant 0 : index
        %43 = vector.load %arg6[%c0_34, %c0_35] : memref<16x8xf32, #tpu.memory_space<vmem>>, vector<16x8xf32>
        %44 = arith.mulf %42, %43 : vector<16x8xf32>
        %cst_36 = arith.constant dense<0.000000e+00> : vector<16xf32>
        %45 = vector.multi_reduction <add>, %44, %cst_36 [1] : vector<16x8xf32> to vector<16xf32>
        %46 = vector.shape_cast %45 : vector<16xf32> to vector<16x1xf32>
        %cst_37 = arith.constant 9.765625E-4 : f32
        %47 = vector.broadcast %cst_37 : f32 to vector<16x1xf32>
        %48 = arith.mulf %40, %47 : vector<16x1xf32>
        %cst_38 = arith.constant 9.765625E-4 : f32
        %49 = vector.broadcast %cst_38 : f32 to vector<16x1xf32>
        %50 = arith.mulf %46, %49 : vector<16x1xf32>
        %51 = arith.mulf %48, %48 : vector<16x1xf32>
        %52 = arith.subf %50, %51 : vector<16x1xf32>
        %cst_39 = arith.constant 0.000000e+00 : f32
        %53 = vector.broadcast %cst_39 : f32 to vector<16x1xf32>
        %54 = arith.maximumf %52, %53 : vector<16x1xf32>
        %cst_40 = arith.constant 9.99999974E-6 : f32
        %55 = vector.broadcast %cst_40 : f32 to vector<16x1xf32>
        %56 = arith.addf %54, %55 : vector<16x1xf32>
        %57 = math.rsqrt %56 : vector<16x1xf32>
        %c0_41 = arith.constant 0 : index
        %c0_42 = arith.constant 0 : index
        %58 = vector.load %arg7[%c0_41, %c0_42] : memref<16x1xf32, #tpu.memory_space<vmem>>, vector<16x1xf32>
        %59 = arith.mulf %57, %58 : vector<16x1xf32>
        %c0_43 = arith.constant 0 : index
        %c0_44 = arith.constant 0 : index
        %60 = vector.load %arg12[%c0_43, %c0_44] : memref<16x1xf32, #tpu.memory_space<vmem>>, vector<16x1xf32>
        tpu.vector_store %arg12[%c0_43, %c0_44], %59 {strides = array<i32>} : memref<16x1xf32, #tpu.memory_space<vmem>>, vector<16x1xf32>,
        %c0_45 = arith.constant 0 : index
        %c0_46 = arith.constant 0 : index
        %61 = vector.load %arg8[%c0_45, %c0_46] : memref<16x1xf32, #tpu.memory_space<vmem>>, vector<16x1xf32>
        %62 = arith.mulf %48, %59 : vector<16x1xf32>
        %63 = arith.subf %61, %62 : vector<16x1xf32>
        %c0_47 = arith.constant 0 : index
        %c0_48 = arith.constant 0 : index
        %64 = vector.load %arg13[%c0_47, %c0_48] : memref<16x1xf32, #tpu.memory_space<vmem>>, vector<16x1xf32>
        tpu.vector_store %arg13[%c0_47, %c0_48], %63 {strides = array<i32>} : memref<16x1xf32, #tpu.memory_space<vmem>>, vector<16x1xf32>,
        %c0_49 = arith.constant 0 : index
        %c0_50 = arith.constant 0 : index
        %65 = vector.load %arg6[%c0_49, %c0_50] : memref<16x8xf32, #tpu.memory_space<vmem>>, vector<16x8xf32>
        %66 = vector.broadcast %59 : vector<16x1xf32> to vector<16x8xf32>
        %67 = arith.mulf %65, %66 : vector<16x8xf32>
        %c0_51 = arith.constant 0 : index
        %c0_52 = arith.constant 0 : index
        %68 = vector.load %arg20[%c0_51, %c0_52] : memref<16x8xf32, #tpu.memory_space<vmem>>, vector<16x8xf32>
        tpu.vector_store %arg20[%c0_51, %c0_52], %67 {strides = array<i32>} : memref<16x8xf32, #tpu.memory_space<vmem>>, vector<16x8xf32>,
      } else {
      }
    } else {
    }
    %c1_i32_10 = arith.constant 1 : i32
    %21 = arith.cmpi eq, %arg0, %c1_i32_10 : i32
    %22 = arith.extui %21 : i1 to i32
    %c0_i32_11 = arith.constant 0 : i32
    %23 = arith.cmpi ne, %22, %c0_i32_11 : i32
    scf.if %23 {
      %24 = arith.extui %2 : i1 to i32
      %c0_i32_12 = arith.constant 0 : i32
      %25 = arith.cmpi ne, %24, %c0_i32_12 : i32
      scf.if %25 {
        %cst_30 = arith.constant 0.000000e+00 : f32
        %45 = vector.broadcast %cst_30 : f32 to vector<16x16xf32>
        %c0_31 = arith.constant 0 : index
        %c0_32 = arith.constant 0 : index
        %46 = vector.load %arg18[%c0_31, %c0_32] : memref<16x16xf32, #tpu.memory_space<vmem>>, vector<16x16xf32>
        tpu.vector_store %arg18[%c0_31, %c0_32], %45 {strides = array<i32>} : memref<16x16xf32, #tpu.memory_space<vmem>>, vector<16x16xf32>,
        %cst_33 = arith.constant 0.000000e+00 : f32
        %47 = vector.broadcast %cst_33 : f32 to vector<16x1xf32>
        %c0_34 = arith.constant 0 : index
        %c0_35 = arith.constant 0 : index
        %48 = vector.load %arg19[%c0_34, %c0_35] : memref<16x1xf32, #tpu.memory_space<vmem>>, vector<16x1xf32>
        tpu.vector_store %arg19[%c0_34, %c0_35], %47 {strides = array<i32>} : memref<16x1xf32, #tpu.memory_space<vmem>>, vector<16x1xf32>,
      } else {
      }
      %c0_13 = arith.constant 0 : index
      %c0_14 = arith.constant 0 : index
      %26 = vector.load %arg20[%c0_13, %c0_14] : memref<16x8xf32, #tpu.memory_space<vmem>>, vector<16x8xf32>
      %cst_15 = arith.constant dense<0.000000e+00> : vector<16x512xf32>
      %27 = tpu.matmul %26, %17, %cst_15 {dimension_numbers = #tpu.dot_dimension_numbers<[1], [0], [0], [1], [0, 0, 1, 1], [], []>} : vector<16x8xf32>, vector<8x512xf32>, vector<16x512xf32> -> vector<16x512xf32>
      %c0_16 = arith.constant 0 : index
      %c0_17 = arith.constant 0 : index
      %28 = vector.load %arg13[%c0_16, %c0_17] : memref<16x1xf32, #tpu.memory_space<vmem>>, vector<16x1xf32>
      %29 = vector.broadcast %28 : vector<16x1xf32> to vector<16x512xf32>
      %30 = arith.addf %27, %29 : vector<16x512xf32>
      %cst_18 = arith.constant 2.000000e-01 : f32
      %31 = vector.broadcast %cst_18 : f32 to vector<16x512xf32>
      %32 = arith.mulf %31, %30 : vector<16x512xf32>
      %33 = arith.maximumf %30, %32 : vector<16x512xf32>
      %c0_19 = arith.constant 0 : index
      %c0_20 = arith.constant 0 : index
      %34 = vector.load %arg18[%c0_19, %c0_20] : memref<16x16xf32, #tpu.memory_space<vmem>>, vector<16x16xf32>
      %cst_21 = arith.constant dense<0.000000e+00> : vector<16x16xf32>
      %35 = tpu.matmul %33, %33, %cst_21 {dimension_numbers = #tpu.dot_dimension_numbers<[1], [1], [0], [0], [0, 0, 1, 0], [], []>} : vector<16x512xf32>, vector<16x512xf32>, vector<16x16xf32> -> vector<16x16xf32>
      %36 = arith.addf %34, %35 : vector<16x16xf32>
      %c0_22 = arith.constant 0 : index
      %c0_23 = arith.constant 0 : index
      %37 = vector.load %arg18[%c0_22, %c0_23] : memref<16x16xf32, #tpu.memory_space<vmem>>, vector<16x16xf32>
      tpu.vector_store %arg18[%c0_22, %c0_23], %36 {strides = array<i32>} : memref<16x16xf32, #tpu.memory_space<vmem>>, vector<16x16xf32>,
      %c0_24 = arith.constant 0 : index
      %c0_25 = arith.constant 0 : index
      %38 = vector.load %arg19[%c0_24, %c0_25] : memref<16x1xf32, #tpu.memory_space<vmem>>, vector<16x1xf32>
      %cst_26 = arith.constant dense<0.000000e+00> : vector<16xf32>
      %39 = vector.multi_reduction <add>, %33, %cst_26 [1] : vector<16x512xf32> to vector<16xf32>
      %40 = vector.shape_cast %39 : vector<16xf32> to vector<16x1xf32>
      %41 = arith.addf %38, %40 : vector<16x1xf32>
      %c0_27 = arith.constant 0 : index
      %c0_28 = arith.constant 0 : index
      %42 = vector.load %arg19[%c0_27, %c0_28] : memref<16x1xf32, #tpu.memory_space<vmem>>, vector<16x1xf32>
      tpu.vector_store %arg19[%c0_27, %c0_28], %41 {strides = array<i32>} : memref<16x1xf32, #tpu.memory_space<vmem>>, vector<16x1xf32>,
      %43 = arith.extui %5 : i1 to i32
      %c0_i32_29 = arith.constant 0 : i32
      %44 = arith.cmpi ne, %43, %c0_i32_29 : i32
      scf.if %44 {
        %c0_30 = arith.constant 0 : index
        %c0_31 = arith.constant 0 : index
        %45 = vector.load %arg19[%c0_30, %c0_31] : memref<16x1xf32, #tpu.memory_space<vmem>>, vector<16x1xf32>
        %c0_32 = arith.constant 0 : index
        %c0_33 = arith.constant 0 : index
        %46 = vector.load %arg18[%c0_32, %c0_33] : memref<16x16xf32, #tpu.memory_space<vmem>>, vector<16x16xf32>
        %c0_34 = arith.constant 0 : index
        %c0_35 = arith.constant 0 : index
        %47 = vector.load %arg9[%c0_34, %c0_35] : memref<32x16xf32, #tpu.memory_space<vmem>>, vector<32x16xf32>
        %cst_36 = arith.constant dense<0.000000e+00> : vector<32x1xf32>
        %48 = tpu.matmul %47, %45, %cst_36 {dimension_numbers = #tpu.dot_dimension_numbers<[1], [0], [0], [1], [0, 0, 1, 1], [], []>} : vector<32x16xf32>, vector<16x1xf32>, vector<32x1xf32> -> vector<32x1xf32>
        %c0_37 = arith.constant 0 : index
        %c0_38 = arith.constant 0 : index
        %49 = vector.load %arg9[%c0_37, %c0_38] : memref<32x16xf32, #tpu.memory_space<vmem>>, vector<32x16xf32>
        %cst_39 = arith.constant dense<0.000000e+00> : vector<32x16xf32>
        %50 = tpu.matmul %49, %46, %cst_39 {dimension_numbers = #tpu.dot_dimension_numbers<[1], [0], [0], [1], [0, 0, 1, 1], [], []>} : vector<32x16xf32>, vector<16x16xf32>, vector<32x16xf32> -> vector<32x16xf32>
        %c0_40 = arith.constant 0 : index
        %c0_41 = arith.constant 0 : index
        %51 = vector.load %arg9[%c0_40, %c0_41] : memref<32x16xf32, #tpu.memory_space<vmem>>, vector<32x16xf32>
        %52 = arith.mulf %50, %51 : vector<32x16xf32>
        %cst_42 = arith.constant dense<0.000000e+00> : vector<32xf32>
        %53 = vector.multi_reduction <add>, %52, %cst_42 [1] : vector<32x16xf32> to vector<32xf32>
        %54 = vector.shape_cast %53 : vector<32xf32> to vector<32x1xf32>
        %cst_43 = arith.constant 9.765625E-4 : f32
        %55 = vector.broadcast %cst_43 : f32 to vector<32x1xf32>
        %56 = arith.mulf %48, %55 : vector<32x1xf32>
        %cst_44 = arith.constant 9.765625E-4 : f32
        %57 = vector.broadcast %cst_44 : f32 to vector<32x1xf32>
        %58 = arith.mulf %54, %57 : vector<32x1xf32>
        %59 = arith.mulf %56, %56 : vector<32x1xf32>
        %60 = arith.subf %58, %59 : vector<32x1xf32>
        %cst_45 = arith.constant 0.000000e+00 : f32
        %61 = vector.broadcast %cst_45 : f32 to vector<32x1xf32>
        %62 = arith.maximumf %60, %61 : vector<32x1xf32>
        %cst_46 = arith.constant 9.99999974E-6 : f32
        %63 = vector.broadcast %cst_46 : f32 to vector<32x1xf32>
        %64 = arith.addf %62, %63 : vector<32x1xf32>
        %65 = math.rsqrt %64 : vector<32x1xf32>
        %c0_47 = arith.constant 0 : index
        %c0_48 = arith.constant 0 : index
        %66 = vector.load %arg10[%c0_47, %c0_48] : memref<32x1xf32, #tpu.memory_space<vmem>>, vector<32x1xf32>
        %67 = arith.mulf %65, %66 : vector<32x1xf32>
        %c0_49 = arith.constant 0 : index
        %c0_50 = arith.constant 0 : index
        %68 = vector.load %arg14[%c0_49, %c0_50] : memref<32x1xf32, #tpu.memory_space<vmem>>, vector<32x1xf32>
        tpu.vector_store %arg14[%c0_49, %c0_50], %67 {strides = array<i32>} : memref<32x1xf32, #tpu.memory_space<vmem>>, vector<32x1xf32>,
        %c0_51 = arith.constant 0 : index
        %c0_52 = arith.constant 0 : index
        %69 = vector.load %arg11[%c0_51, %c0_52] : memref<32x1xf32, #tpu.memory_space<vmem>>, vector<32x1xf32>
        %70 = arith.mulf %56, %67 : vector<32x1xf32>
        %71 = arith.subf %69, %70 : vector<32x1xf32>
        %c0_53 = arith.constant 0 : index
        %c0_54 = arith.constant 0 : index
        %72 = vector.load %arg15[%c0_53, %c0_54] : memref<32x1xf32, #tpu.memory_space<vmem>>, vector<32x1xf32>
        tpu.vector_store %arg15[%c0_53, %c0_54], %71 {strides = array<i32>} : memref<32x1xf32, #tpu.memory_space<vmem>>, vector<32x1xf32>,
      } else {
      }
    } else {
    }
    return
  }
  func.func @transform_0(%arg0: i32, %arg1: i32, %arg2: i32) -> (i32, i32, i32) {
    %c0_i32 = arith.constant 0 : i32
    %c0_i32_0 = arith.constant 0 : i32
    return %arg1, %c0_i32, %arg2 : i32, i32, i32
  }
  func.func @transform_1(%arg0: i32, %arg1: i32, %arg2: i32) -> (i32, i32) {
    %c0_i32 = arith.constant 0 : i32
    %c0_i32_0 = arith.constant 0 : i32
    %c0_i32_1 = arith.constant 0 : i32
    return %c0_i32, %c0_i32_0 : i32, i32
  }
  func.func @transform_2(%arg0: i32, %arg1: i32, %arg2: i32) -> (i32, i32) {
    %c0_i32 = arith.constant 0 : i32
    %c0_i32_0 = arith.constant 0 : i32
    %c0_i32_1 = arith.constant 0 : i32
    return %c0_i32, %c0_i32_0 : i32, i32
  }
  func.func @transform_3(%arg0: i32, %arg1: i32, %arg2: i32) -> (i32, i32) {
    %c0_i32 = arith.constant 0 : i32
    %c0_i32_0 = arith.constant 0 : i32
    %c0_i32_1 = arith.constant 0 : i32
    return %c0_i32, %c0_i32_0 : i32, i32
  }
  func.func @transform_4(%arg0: i32, %arg1: i32, %arg2: i32) -> (i32, i32) {
    %c0_i32 = arith.constant 0 : i32
    %c0_i32_0 = arith.constant 0 : i32
    %c0_i32_1 = arith.constant 0 : i32
    return %c0_i32, %c0_i32_0 : i32, i32
  }
  func.func @transform_5(%arg0: i32, %arg1: i32, %arg2: i32) -> (i32, i32) {
    %c0_i32 = arith.constant 0 : i32
    %c0_i32_0 = arith.constant 0 : i32
    %c0_i32_1 = arith.constant 0 : i32
    return %c0_i32, %c0_i32_0 : i32, i32
  }
  func.func @transform_6(%arg0: i32, %arg1: i32, %arg2: i32) -> (i32, i32) {
    %c0_i32 = arith.constant 0 : i32
    %c0_i32_0 = arith.constant 0 : i32
    %c0_i32_1 = arith.constant 0 : i32
    return %c0_i32, %c0_i32_0 : i32, i32
  }
  func.func @transform_7(%arg0: i32, %arg1: i32, %arg2: i32) -> (i32, i32) {
    %c0_i32 = arith.constant 0 : i32
    %c0_i32_0 = arith.constant 0 : i32
    %c0_i32_1 = arith.constant 0 : i32
    return %c0_i32, %c0_i32_0 : i32, i32
  }
  func.func @transform_8(%arg0: i32, %arg1: i32, %arg2: i32) -> (i32, i32) {
    %c0_i32 = arith.constant 0 : i32
    %c0_i32_0 = arith.constant 0 : i32
    %c0_i32_1 = arith.constant 0 : i32
    return %c0_i32, %c0_i32_0 : i32, i32
  }
  func.func @transform_9(%arg0: i32, %arg1: i32, %arg2: i32) -> (i32, i32) {
    %c0_i32 = arith.constant 0 : i32
    %c0_i32_0 = arith.constant 0 : i32
    %c0_i32_1 = arith.constant 0 : i32
    return %c0_i32, %c0_i32_0 : i32, i32
  }
  func.func @transform_10(%arg0: i32, %arg1: i32, %arg2: i32) -> (i32, i32) {
    %c0_i32 = arith.constant 0 : i32
    %c0_i32_0 = arith.constant 0 : i32
    %c0_i32_1 = arith.constant 0 : i32
    return %c0_i32, %c0_i32_0 : i32, i32
  }
  func.func @transform_11(%arg0: i32, %arg1: i32, %arg2: i32) -> (i32, i32) {
    %c0_i32 = arith.constant 0 : i32
    %c0_i32_0 = arith.constant 0 : i32
    %c0_i32_1 = arith.constant 0 : i32
    return %c0_i32, %c0_i32_0 : i32, i32
  }
  func.func @transform_12(%arg0: i32, %arg1: i32, %arg2: i32) -> (i32, i32) {
    %c0_i32 = arith.constant 0 : i32
    %c0_i32_0 = arith.constant 0 : i32
    %c0_i32_1 = arith.constant 0 : i32
    return %c0_i32, %c0_i32_0 : i32, i32
  }
}

</mosaic_0001>

<bundles_post_ra>
// kernel: tpu_custom_call.1
= control target key start
LH: loop header
LB: loop body
LE: loop exit
PB: predicated region body
PF: predicated region fallthrough
CT: control target
= control target key end

     0   :  { %s1811_s21 = smov 0   ;;  %s1813_s22 = smov 0   ;;  %s2045_s0 = inlined_call_operand.vmem [shape: f32[2,1,512], index: 0, kind: input, shape index: {}]   ;;  %s2046_s1 = inlined_call_operand.vmem [shape: f32[8,1], index: 1, kind: input, shape index: {}]   ;;  %s2047_s2 = inlined_call_operand.vmem [shape: f32[8,1], index: 2, kind: input, shape index: {}]   ;;  %s2048_s3 = inlined_call_operand.vmem [shape: f32[16,8], index: 3, kind: input, shape index: {}]   ;;  %s2049_s4 = inlined_call_operand.vmem [shape: f32[16,1], index: 4, kind: input, shape index: {}]   ;;  %s2050_s5 = inlined_call_operand.vmem [shape: f32[16,1], index: 5, kind: input, shape index: {}]   ;;  %s2051_s6 = inlined_call_operand.vmem [shape: f32[32,16], index: 6, kind: input, shape index: {}]   ;;  %s2052_s7 = inlined_call_operand.vmem [shape: f32[32,1], index: 7, kind: input, shape index: {}]   ;;  %s2053_s8 = inlined_call_operand.vmem [shape: f32[32,1], index: 8, kind: input, shape index: {}]   ;;  %s2054_s9 = inlined_call_operand.vmem [shape: f32[16,1], index: 9, kind: output, shape index: {0}]   ;;  %s2055_s10 = inlined_call_operand.vmem [shape: f32[16,1], index: 10, kind: output, shape index: {1}]   ;;  %s2056_s11 = inlined_call_operand.vmem [shape: f32[32,1], index: 11, kind: output, shape index: {2}]   ;;  %s2057_s12 = inlined_call_operand.vmem [shape: f32[32,1], index: 12, kind: output, shape index: {3}]  }
   0x1   :  { %s1815_s23 = smov 0   ;;  %s1817_s24 = smov 0  }
   0x2   :  { %s1819_s25 = smov 0  }
   0x3 LB: > { %s38_s26 = sadd.s32 1, %s1730_s23  ;;  %s42_s27 = sadd.s32 1, %s1734_s24  ;;  %s1738_s25 = sphi %s1819_s25, %s23_s25   ;;  %s1734_s24 = sphi %s1817_s24, %s2061_s24   ;;  %s1730_s23 = sphi %s1815_s23, %s2060_s23   ;;  %s1726_s22 = sphi %s1813_s22, %s2059_s22   ;;  %s1722_s21 = sphi %s1811_s21, %s2058_s21  }
   0x4   : > { %p40_p0 = scmp.ge.s32.totalorder %s38_s26, 2  ;;  %p1564_p1 = scmp.ge.s32.totalorder %s1738_s25, 1 }
   0x5   : > { %p374_p2 = scmp.lt.s32.totalorder %s1738_s25, 5 }
   0x6   : > { %s2063_s26 = smov (%p40_p0, %s38_s26), 0  ;;  %s2065_s27 = smov (!%p40_p0, %s42_s27), %s1734_s24 }
   0x7   : > { %p375_p3 = pnand %p1564_p1, %p374_p2  ;;  %p44_p4 = scmp.ge.s32.totalorder %s2065_s27, 2 }
   0x8   : > { %p423_p5 = scmp.eq.s32.totalorder (!%p375_p3), %s1722_s21, 0  ;;  %p427_p6 = scmp.eq.s32.totalorder (!%p375_p3), %s1722_s21, 1 }
   0x9   : > { %s2067_s27 = smov (%p44_p4, %s2065_s27), 0  ;;  %378 = sbr.rel (%p375_p3) target bundleno = 1671 (0x687), region = 56 }
   0xa   : > { %p415_p7 = scmp.lt.s32.totalorder (!%p375_p3), %s1722_s21, 1  ;;  %p1568_p8 = scmp.ne.s32.totalorder (!%p375_p3), %s1726_s22, 0 }
   0xe   : > { %v431_v0 = vld [vmem:[%s2046_s1] sm:$0xff]  ;;  %v1740_v1 = vmov 0   ;;  %s416_s14 = scalar_select %p415_p7, %s1722_s21, 1  ;;  %v438_v3 = vlaneseq }
   0xf   : > { %1684 = vset.pattern.permute.xlu0 %v1740_v1  ;;  %v462_v2 = vld [vmem:[%s2047_s2] sm:$0xff] }
  0x10   : > { %434 = vperm.xlu0 %1684, %v431_v0   ;;  %s1565_s15 = sshll.u32 %s416_s14, 2  ;;  %v439_v4 = vshrl.u32 %v438_v3, 7 }
  0x11   : > { %s421_s18 = scalar_lea.vmem %s2045_s0, %s1565_s15 }
  0x12   : > { %v440_v5 = vsub.s32 0, %v439_v4  ;;  %v444_v6 = vsub.s32 1, %v439_v4  ;;  %v448_v7 = vsub.s32 2, %v439_v4  ;;  %v452_v8 = vsub.s32 3, %v439_v4  ;;  %v430_v9 = vld [vmem:[%s421_s18] sm:$0xf] }
  0x14   : > { %465 = vperm.xlu0 %1684, %v462_v2   ;;  %v441_v10 = vrot.slane %v430_v9, %v440_v5  ;;  %v445_v11 = vrot.slane %v430_v9, %v444_v6  ;;  %v449_v12 = vrot.slane %v430_v9, %v448_v7  ;;  %v453_v13 = vrot.slane %v430_v9, %v452_v8 }
  0x8b   : > { %v435_v14 = vpop.permute.xlu0 %434 }
  0x8c   : > { %v458_v15 = vmul.f32 %v441_v10, %v435_v14  ;;  %v459_v16 = vmul.f32 %v445_v11, %v435_v14  ;;  %v460_v17 = vmul.f32 %v449_v12, %v435_v14  ;;  %v461_v18 = vmul.f32 %v453_v13, %v435_v14 }
  0x8f   : > { %v466_v19 = vpop.permute.xlu0 %465 }
  0x90   : > { %v468_v20 = vadd.f32 %v466_v19, %v458_v15  ;;  %v469_v21 = vadd.f32 %v466_v19, %v459_v16  ;;  %v470_v22 = vadd.f32 %v466_v19, %v460_v17  ;;  %v471_v23 = vadd.f32 %v466_v19, %v461_v18 }
  0x91   : > { %483 = sbr.rel (%p1568_p8) target bundleno = 857 (0x359), region = 60 }
  0x92   : > { %v472_v24 = vmul.f32 0.2, %v468_v20  ;;  %v473_v25 = vmul.f32 0.2, %v469_v21  ;;  %v474_v26 = vmul.f32 0.2, %v470_v22 }
  0x93   : > { %v475_v27 = vmul.f32 0.2, %v471_v23 }
  0x94   : > { %v1858_v28 = vmax.f32 %v468_v20, %v472_v24  ;;  %v1860_v29 = vmax.f32 %v469_v21, %v473_v25  ;;  %v1862_v30 = vmax.f32 %v470_v22, %v474_v26 }
  0x95   : > { %v1864_v31 = vmax.f32 %v471_v23, %v475_v27 }
  0x96   : > { %485 = sbr.rel (!%p423_p5) target bundleno = 155 (0x9b), region = 64  ;;  %vm486_vm0 = vcmask (%p423_p5), 64512   ;;  %vm488_vm1 = vcmask (%p423_p5), 7168   ;;  %v1741_v32 = vmov (%p423_p5), 0.0  }
  0x97   : > { %487 = vst.msk [vmem:[#allocation2] sm:$0xff] (%p423_p5), %vm486_vm0, %v1741_v32 }
  0x98   : > { %489 = vst.msk [vmem:[#allocation3] sm:$0xff] (%p423_p5), %vm488_vm1, %v1741_v32 }
  0x9b PF: > { %521 = vmatprep.subr.mxu0 %v1860_v29  ;;  %591 = vmatprep.subr.mxu1 %v1864_v31  ;;  %v635_v33 = vadd.f32 %v1860_v29, %v1858_v28  ;;  %vm641_vm2 = vcmask 7168   ;;  %vm632_vm3 = vcmask 64512   ;;  %v647_v47 = vld [vmem:[%s2048_s3] sm:$0xff] (%p427_p6)  ;;  %v648_v48 = vld [vmem:[%s2048_s3 + $0x8] sm:$0xff] (%p427_p6)  ;;  %v1742_v56 = vmov (%p427_p6), 0  }
  0x9c   : > { %522 = vmatpush1.xpose.msra.mxu0 %v1858_v28  ;;  %592 = vmatpush1.xpose.msra.mxu1 %v1862_v30  ;;  %v827_v9 = vld [vmem:[%s2049_s4] sm:$0xff] (%p427_p6)  ;;  %v828_v13 = vld [vmem:[%s2049_s4 + $0x8] sm:$0xff] (%p427_p6) }
  0x9d   : > { %555 = vmatprep.mubr.f32.mxu0 %v1860_v29  ;;  %625 = vmatprep.mubr.f32.mxu1 %v1864_v31  ;;  %v636_v34 = vadd.f32 %v635_v33, %v1862_v30  ;;  %v833_v12 = vld [vmem:[%s2050_s5] sm:$0xff] (%p427_p6)  ;;  %v834_v18 = vld [vmem:[%s2050_s5 + $0x8] sm:$0xff] (%p427_p6) }
  0x9e   : > { %v490_v40 = vld [vmem:[#allocation2] sm:$0xff]  ;;  %1685 = vset.pattern.permute.xlu1 (%p427_p6), %v1742_v56  ;;  %1686 = vset.pattern.permute.xlu0 (%p427_p6), %v1742_v56 }
  0x9f   : > { %556 = vmatmul.mubr.f32.vlgmr.msra.gmra.mxu0 %v1858_v28  ;;  %626 = vmatmul.mubr.f32.vlgmr.msra.gmra.mxu1 %v1862_v30  ;;  %v637_v35 = vadd.f32 %v636_v34, %v1864_v31  ;;  %v634_v36 = vld [vmem:[#allocation3] sm:$0xff] }
  0xa0   : > { %1615 = vmatprep.mubr.msk.f32.mxu1 (%p427_p6), %vm632_vm3, %v647_v47  ;;  %1610 = vmatprep.mubr.msk.f32.mxu0 (%p427_p6), %vm632_vm3, %v647_v47 }
  0xa1   : > { %638 = vadd.xlane.f32.xlu0 %v637_v35 }
 0x12a   : > { %v639_v37 = vpop.xlane.xlu0 %638 }
 0x12b   : > { %v640_v38 = vadd.f32 %v639_v37, %v634_v36 }
 0x12d   : > { %642 = vst.msk [vmem:[#allocation3] sm:$0xff] %vm641_vm2, %v640_v38 }
 0x134   : > { %v645_v49 = vld [vmem:[#allocation3] sm:$0xff] (%p427_p6) }
 0x135   : > { %1608 = vmatprep.subr.mxu0 (%p427_p6), %v645_v49 }
 0x136   : > { %1609 = vmatpush3.msra.mxu0 (%p427_p6), %v645_v49 }
 0x137   : > { %1611 = vmatmul.mubr.msk.f32.vlgmr.msra.gmra.mxu0 (%p427_p6), %vm632_vm3, %v648_v48 }
 0x15f   : > { %v557_v39 = vpop.f32.mrf.mxu0  ;;  %v627_v41 = vpop.f32.mrf.mxu1 }
 0x160   : > { %v628_v42 = vadd.f32 %v627_v41, %v557_v39  ;;  %644 = sbr.rel (!%p427_p6) target bundleno = 857 (0x359), region = 68 }
 0x161   : > { %v559_v43 = vpop.f32.mrf.mxu0  ;;  %v629_v44 = vpop.f32.mrf.mxu1 }
 0x162   : > { %v631_v45 = vadd.f32 %v628_v42, %v490_v40 }
 0x164   : > { %633 = vst.msk [vmem:[#allocation2] sm:$0xff] %vm632_vm3, %v631_v45 }
 0x16b   : > { %v646_v46 = vld [vmem:[#allocation2] sm:$0xff] }
 0x16c   : > { %1613 = vmatprep.subr.mxu1 %v646_v46 }
 0x16d   : > { %1614 = vmatpush3.msra.mxu1 %v646_v46 }
 0x16e   : > { %1616 = vmatmul.mubr.msk.f32.vlgmr.msra.gmra.mxu1 %vm632_vm3, %v648_v48 }
 0x1f7   : > { %v1612_v57 = vpop.f32.mrf.mxu0 }
 0x1f8   : > { %v814_v61 = vmul.f32 0.0009765625, %v1612_v57 }
 0x1f9   : > { %v721_v58 = vpop.f32.mrf.mxu0 }
 0x1fa   : > { %v813_v59 = vmul.f32 0.0009765625, %v721_v58  ;;  %v818_v2 = vmul.f32 %v814_v61, %v814_v61 }
 0x1fc   : > { %v817_v62 = vmul.f32 %v813_v59, %v813_v59 }
 0x22e   : > { %v1617_v50 = vpop.f32.mrf.mxu1 }
 0x22f   : > { %v806_v53 = vmul.f32 %v1617_v50, %v648_v48 }
 0x230   : > { %v796_v51 = vpop.f32.mrf.mxu1 }
 0x231   : > { %v805_v52 = vmul.f32 %v796_v51, %v647_v47  ;;  %v810_v55 = vsel %vm632_vm3, %v806_v53, 0.0 }
 0x233   : > { %v807_v54 = vsel %vm632_vm3, %v805_v52, 0.0 }
 0x234   : > { %808 = vadd.xlane.f32.xlu0 %v807_v54 }
 0x238   : > { %811 = vadd.xlane.f32.xlu0 %v810_v55 }
 0x2bd   : > { %v809_v60 = vpop.xlane.xlu0 %808 }
 0x2be   : > { %v815_v63 = vmul.f32 0.0009765625, %v809_v60 }
 0x2c0   : > { %v819_v0 = vsub.f32 %v815_v63, %v817_v62 }
 0x2c1   : > { %v812_v1 = vpop.xlane.xlu0 %811 }
 0x2c2   : > { %v821_v3 = vmax.f32 %v819_v0, 0.0  ;;  %v816_v4 = vmul.f32 0.0009765625, %v812_v1 }
 0x2c4   : > { %v823_v5 = vadd.f32 1e-05, %v821_v3  ;;  %v820_v6 = vsub.f32 %v816_v4, %v818_v2 }
 0x2c6   : > { %1687 = vrsqrt.f32 %v823_v5  ;;  %v822_v7 = vmax.f32 %v820_v6, 0.0 }
 0x2c8   : > { %v824_v8 = vadd.f32 1e-05, %v822_v7 }
 0x2ca   : > { %1689 = vrsqrt.f32 %v824_v8 }
 0x2d3   : > { %v1688_v10 = vpop.eup %1687 }
 0x2d4   : > { %v829_v11 = vmul.f32 %v1688_v10, %v827_v9 }
 0x2d6   : > { %845 = vperm.xlu1 %1685, %v829_v11   ;;  %831 = vst.msk [vmem:[%s2054_s9] sm:$0xff] %vm641_vm2, %v829_v11  ;;  %v835_v14 = vmul.f32 %v829_v11, %v813_v59 }
 0x2d7   : > { %v1690_v15 = vpop.eup %1689 }
 0x2d8   : > { %v837_v16 = vsub.f32 %v833_v12, %v835_v14  ;;  %v830_v17 = vmul.f32 %v1690_v15, %v828_v13 }
 0x2da   : > { %839 = vst.msk [vmem:[%s2055_s10] sm:$0xff] %vm641_vm2, %v837_v16  ;;  %832 = vst.msk [vmem:[%s2054_s9 + $0x8] sm:$0xff] %vm641_vm2, %v830_v17  ;;  %v836_v19 = vmul.f32 %v830_v17, %v814_v61  ;;  %850 = vperm.xlu1 %1685, %v830_v17  }
 0x2dc   : > { %v838_v20 = vsub.f32 %v834_v18, %v836_v19 }
 0x2de   : > { %840 = vst.msk [vmem:[%s2055_s10 + $0x8] sm:$0xff] %vm641_vm2, %v838_v20 }
 0x351   : > { %v846_v21 = vpop.permute.xlu1 %845 }
 0x352   : > { %v853_v22 = vmul.f32 %v846_v21, %v647_v47 }
 0x354   : > { %855 = vst.msk [vmem:[#allocation6] sm:$0xff] %vm632_vm3, %v853_v22 }
 0x355   : > { %v851_v23 = vpop.permute.xlu1 %850 }
 0x356   : > { %v854_v24 = vmul.f32 %v851_v23, %v648_v48 }
 0x358   : > { %856 = vst.msk [vmem:[#allocation6 + $0x8] sm:$0xff] %vm632_vm3, %v854_v24 }
 0x359 PF: > { %p1573_p9 = scmp.ne.s32.totalorder %s1726_s22, 1 }
 0x35b   : > { %860 = sbr.rel (%p1573_p9) target bundleno = 1671 (0x687), region = 72 }
 0x360   : > { %862 = sbr.rel (!%p423_p5) target bundleno = 869 (0x365), region = 76  ;;  %vm863_vm4 = vcmask (%p423_p5), 130048   ;;  %vm866_vm5 = vcmask (%p423_p5), 7168   ;;  %v1743_v25 = vmov (%p423_p5), 0.0  }
 0x361   : > { %864 = vst.msk [vmem:[#allocation4] sm:$0xff] (%p423_p5), %vm863_vm4, %v1743_v25  ;;  %865 = vst.msk [vmem:[#allocation4 + $0x8] sm:$0xff] (%p423_p5), %vm863_vm4, %v1743_v25 }
 0x362   : > { %867 = vst.msk [vmem:[#allocation5] sm:$0xff] (%p423_p5), %vm866_vm5, %v1743_v25  ;;  %868 = vst.msk [vmem:[#allocation5 + $0x8] sm:$0xff] (%p423_p5), %vm866_vm5, %v1743_v25 }
 0x365 PF: > { %920 = vmatprep.subr.mxu0 %v1860_v29  ;;  %997 = vmatprep.subr.mxu1 %v1864_v31  ;;  %v869_v26 = vld [vmem:[#allocation6] sm:$0xff]  ;;  %vm883_vm6 = vcmask 64512   ;;  %v1744_v27 = vmov 0.0   ;;  %v872_v32 = vld [vmem:[%s2055_s10 + $0x8] sm:$0xff]  ;;  %v870_v29 = vld [vmem:[#allocation6 + $0x8] sm:$0xff]  ;;  %v1745_v31 = vmov 0  }
 0x366   : > { %921 = vmatpush1.msra.mxu0 %v1858_v28  ;;  %954 = vmatprep.mubr.f32.mxu0 %v1744_v27  ;;  %v871_v28 = vld [vmem:[%s2055_s10] sm:$0xff]  ;;  %vm1231_vm7 = vcmask 7168   ;;  %vm1214_vm8 = vcmask 130048  }
 0x367   : > { %998 = vmatpush1.msra.mxu1 %v1862_v30  ;;  %1031 = vmatprep.mubr.f32.mxu1 %v1744_v27 }
 0x368   : > { %1574 = vmatmul.mubr.msk.f32.vlgmr.msra.gmra.mxu0 %vm883_vm6, %v869_v26  ;;  %1576 = vmatmul.mubr.msk.f32.vlgmr.msra.gmra.mxu1 %vm883_vm6, %v869_v26  ;;  %v1060_v15 = vld [vmem:[#allocation4] sm:$0xff]  ;;  %v1061_v22 = vld [vmem:[#allocation4 + $0x8] sm:$0xff] }
 0x369   : > { %960 = vmatprep.mubr.f32.mxu0 %v1744_v27  ;;  %1037 = vmatprep.mubr.f32.mxu1 %v1744_v27  ;;  %v1217_v8 = vld [vmem:[#allocation5] sm:$0xff]  ;;  %v1218_v11 = vld [vmem:[#allocation5 + $0x8] sm:$0xff] }
 0x36a   : > { %1691 = vset.pattern.permute.xlu0 %v1745_v31  ;;  %v1240_v31 = vld [vmem:[%s2051_s6] sm:$0xff] (%p427_p6) }
 0x36b   : > { %880 = vperm.xlu0 %1691, %v872_v32  }
 0x36c   : > { %1575 = vmatmul.mubr.msk.f32.gmra.mxu0 %vm883_vm6, %v870_v29  ;;  %1577 = vmatmul.mubr.msk.f32.gmra.mxu1 %vm883_vm6, %v870_v29 }
 0x36f   : > { %875 = vperm.xlu0 %1691, %v871_v28   ;;  %v1241_v28 = vld [vmem:[%s2051_s6 + $0x8] sm:$0xff] (%p427_p6) }
 0x3e6   : > { %v881_v30 = vpop.permute.xlu0 %880 }
 0x3ea   : > { %v876_v33 = vpop.permute.xlu0 %875 }
 0x428   : > { %v956_v34 = vpop.f32.mrf.mxu0  ;;  %v1033_v35 = vpop.f32.mrf.mxu1 }
 0x429   : > { %v957_v36 = vadd.f32 %v956_v34, %v876_v33  ;;  %v1034_v37 = vadd.f32 %v1033_v35, %v876_v33  ;;  %v1242_v34 = vld [vmem:[%s2051_s6 + $0x10] sm:$0xff] (%p427_p6)  ;;  %v1243_v35 = vld [vmem:[%s2051_s6 + $0x18] sm:$0xff] (%p427_p6) }
 0x42a   : > { %v958_v38 = vpop.f32.mrf.mxu0  ;;  %v1035_v39 = vpop.f32.mrf.mxu1 }
 0x42b   : > { %v1044_v40 = vmul.f32 0.2, %v957_v36  ;;  %v959_v41 = vadd.f32 %v958_v38, %v876_v33  ;;  %v1036_v42 = vadd.f32 %v1035_v39, %v876_v33  ;;  %v1046_v45 = vmul.f32 0.2, %v1034_v37 }
 0x42c   : > { %v962_v43 = vpop.f32.mrf.mxu0  ;;  %v1039_v44 = vpop.f32.mrf.mxu1 }
 0x42d   : > { %v1045_v46 = vmul.f32 0.2, %v959_v41  ;;  %v1047_v47 = vmul.f32 0.2, %v1036_v42  ;;  %v1052_v48 = vmax.f32 %v957_v36, %v1044_v40  ;;  %v963_v49 = vadd.f32 %v962_v43, %v881_v30 }
 0x42e   : > { %v1040_v50 = vadd.f32 %v1039_v44, %v881_v30  ;;  %v964_v51 = vpop.f32.mrf.mxu0  ;;  %v1041_v52 = vpop.f32.mrf.mxu1  ;;  %v1054_v59 = vmax.f32 %v1034_v37, %v1046_v45 }
 0x42f   : > { %v1053_v53 = vmax.f32 %v959_v41, %v1045_v46  ;;  %v1055_v54 = vmax.f32 %v1036_v42, %v1047_v47  ;;  %v965_v55 = vadd.f32 %v964_v51, %v881_v30  ;;  %v1042_v56 = vadd.f32 %v1041_v52, %v881_v30 }
 0x430   : > { %v1048_v57 = vmul.f32 0.2, %v963_v49  ;;  %v1050_v58 = vmul.f32 0.2, %v1040_v50 }
 0x431   : > { %v1049_v60 = vmul.f32 0.2, %v965_v55  ;;  %v1051_v61 = vmul.f32 0.2, %v1042_v56  ;;  %1126 = vmatprep.mubr.f32.mxu0 %v1053_v53  ;;  %1201 = vmatprep.mubr.f32.mxu1 %v1055_v54  ;;  %v1219_v62 = vadd.f32 %v1053_v53, %v1052_v48 }
 0x432   : > { %v1056_v63 = vmax.f32 %v963_v49, %v1048_v57  ;;  %v1058_v3 = vmax.f32 %v1040_v50, %v1050_v58 }
 0x433   : > { %v1057_v0 = vmax.f32 %v965_v55, %v1049_v60  ;;  %v1059_v1 = vmax.f32 %v1042_v56, %v1051_v61  ;;  %v1220_v2 = vadd.f32 %v1219_v62, %v1054_v59 }
 0x435   : > { %1090 = vmatprep.subr.mxu0 %v1057_v0  ;;  %1165 = vmatprep.subr.mxu1 %v1059_v1  ;;  %v1221_v4 = vadd.f32 %v1220_v2, %v1055_v54  ;;  %v1224_v5 = vadd.f32 %v1057_v0, %v1056_v63 }
 0x436   : > { %1091 = vmatpush1.xpose.msra.mxu0 %v1056_v63  ;;  %1166 = vmatpush1.xpose.msra.mxu1 %v1058_v3 }
 0x437   : > { %1092 = vmatprep.subr.mxu0 %v1053_v53  ;;  %1167 = vmatprep.subr.mxu1 %v1055_v54  ;;  %v1225_v6 = vadd.f32 %v1224_v5, %v1058_v3 }
 0x438   : > { %1222 = vadd.xlane.f32.xlu1 %v1221_v4 }
 0x439   : > { %v1226_v7 = vadd.f32 %v1225_v6, %v1059_v1 }
 0x43a   : > { %1093 = vmatpush1.xpose.msra.mxu0 %v1052_v48  ;;  %1168 = vmatpush1.xpose.msra.mxu1 %v1054_v59 }
 0x43c   : > { %1227 = vadd.xlane.f32.xlu1 %v1226_v7 }
 0x43d   : > { %1127 = vmatmul.mubr.f32.vlgmr.msra.gmra.mxu0 %v1052_v48  ;;  %1202 = vmatmul.mubr.f32.vlgmr.msra.gmra.mxu1 %v1054_v59 }
 0x43e   : > { %1131 = vmatprep.mubr.f32.mxu0 %v1057_v0  ;;  %1206 = vmatprep.mubr.f32.mxu1 %v1059_v1 }
 0x441   : > { %1132 = vmatmul.mubr.f32.gmra.mxu0 %v1056_v63  ;;  %1207 = vmatmul.mubr.f32.gmra.mxu1 %v1058_v3 }
 0x442   : > { %1632 = vmatprep.mubr.msk.f32.mxu1 (%p427_p6), %vm1214_vm8, %v1240_v31  ;;  %1622 = vmatprep.mubr.msk.f32.mxu0 (%p427_p6), %vm1214_vm8, %v1240_v31 }
 0x4c1   : > { %v1223_v9 = vpop.xlane.xlu1 %1222 }
 0x4c2   : > { %v1229_v10 = vadd.f32 %v1223_v9, %v1217_v8 }
 0x4c4   : > { %1232 = vst.msk [vmem:[#allocation5] sm:$0xff] %vm1231_vm7, %v1229_v10 }
 0x4c5   : > { %v1228_v12 = vpop.xlane.xlu1 %1227 }
 0x4c6   : > { %v1230_v13 = vadd.f32 %v1228_v12, %v1218_v11 }
 0x4c8   : > { %1233 = vst.msk [vmem:[#allocation5 + $0x8] sm:$0xff] %vm1231_vm7, %v1230_v13 }
 0x4cb   : > { %v1236_v33 = vld [vmem:[#allocation5] sm:$0xff] (%p427_p6) }
 0x4cf   : > { %v1237_v30 = vld [vmem:[#allocation5 + $0x8] sm:$0xff] (%p427_p6) }
 0x4d0   : > { %1618 = vmatprep.subr.mxu0 (%p427_p6), %v1237_v30 }
 0x4d1   : > { %1619 = vmatpush3.msra.mxu0 (%p427_p6), %v1237_v30 }
 0x4d2   : > { %1620 = vmatprep.subr.mxu0 (%p427_p6), %v1236_v33 }
 0x4d3   : > { %1621 = vmatpush3.msra.mxu0 (%p427_p6), %v1236_v33 }
 0x4d4   : > { %1623 = vmatmul.mubr.msk.f32.vlgmr.msra.gmra.mxu0 (%p427_p6), %vm1214_vm8, %v1241_v28 }
 0x4d5   : > { %1625 = vmatprep.mubr.msk.f32.mxu0 (%p427_p6), %vm1214_vm8, %v1242_v34 }
 0x4d8   : > { %1626 = vmatmul.mubr.msk.f32.gmra.mxu0 (%p427_p6), %vm1214_vm8, %v1243_v35 }
 0x4fd   : > { %v1128_v14 = vpop.f32.mrf.mxu0  ;;  %v1203_v16 = vpop.f32.mrf.mxu1 }
 0x4fe   : > { %v1204_v17 = vadd.f32 %v1203_v16, %v1128_v14  ;;  %v1470_v16 = vld [vmem:[%s2052_s7] sm:$0xff] (%p427_p6) }
 0x4ff   : > { %v1130_v18 = vpop.f32.mrf.mxu0  ;;  %v1205_v19 = vpop.f32.mrf.mxu1 }
 0x500   : > { %v1212_v20 = vadd.f32 %v1204_v17, %v1060_v15  ;;  %v1482_v19 = vld [vmem:[%s2053_s8] sm:$0xff] (%p427_p6) }
 0x501   : > { %v1133_v21 = vpop.f32.mrf.mxu0  ;;  %v1208_v23 = vpop.f32.mrf.mxu1 }
 0x502   : > { %1215 = vst.msk [vmem:[#allocation4] sm:$0xff] %vm1214_vm8, %v1212_v20  ;;  %v1209_v24 = vadd.f32 %v1208_v23, %v1133_v21  ;;  %1235 = sbr.rel (!%p427_p6) target bundleno = 1671 (0x687), region = 80  ;;  %v1471_v20 = vld [vmem:[%s2052_s7 + $0x8] sm:$0xff] (%p427_p6) }
 0x503   : > { %v1135_v25 = vpop.f32.mrf.mxu0  ;;  %v1210_v26 = vpop.f32.mrf.mxu1 }
 0x504   : > { %v1213_v27 = vadd.f32 %v1209_v24, %v1061_v22  ;;  %v1472_v22 = vld [vmem:[%s2052_s7 + $0x10] sm:$0xff] (%p427_p6) }
 0x506   : > { %1216 = vst.msk [vmem:[#allocation4 + $0x8] sm:$0xff] %vm1214_vm8, %v1213_v27  ;;  %v1483_v27 = vld [vmem:[%s2053_s8 + $0x8] sm:$0xff] (%p427_p6) }
 0x509   : > { %v1238_v29 = vld [vmem:[#allocation4] sm:$0xff] }
 0x50d   : > { %v1239_v32 = vld [vmem:[#allocation4 + $0x8] sm:$0xff] }
 0x50e   : > { %1628 = vmatprep.subr.mxu1 %v1239_v32 }
 0x50f   : > { %1629 = vmatpush3.msra.mxu1 %v1239_v32 }
 0x510   : > { %1630 = vmatprep.subr.mxu1 %v1238_v29 }
 0x511   : > { %1631 = vmatpush3.msra.mxu1 %v1238_v29  ;;  %v1473_v29 = vld [vmem:[%s2052_s7 + $0x18] sm:$0xff] }
 0x512   : > { %1633 = vmatmul.mubr.msk.f32.vlgmr.msra.gmra.mxu1 %vm1214_vm8, %v1241_v28 }
 0x513   : > { %1635 = vmatprep.mubr.msk.f32.mxu1 %vm1214_vm8, %v1242_v34 }
 0x516   : > { %1636 = vmatmul.mubr.msk.f32.gmra.mxu1 %vm1214_vm8, %v1243_v35 }
 0x594   : > { %v1624_v48 = vpop.f32.mrf.mxu0 }
 0x595   : > { %v1443_v56 = vmul.f32 0.0009765625, %v1624_v48 }
 0x596   : > { %v1322_v49 = vpop.f32.mrf.mxu0 }
 0x597   : > { %v1442_v51 = vmul.f32 0.0009765625, %v1322_v49  ;;  %v1451_v63 = vmul.f32 %v1443_v56, %v1443_v56 }
 0x598   : > { %v1627_v50 = vpop.f32.mrf.mxu0 }
 0x599   : > { %v1450_v53 = vmul.f32 %v1442_v51, %v1442_v51  ;;  %v1445_v60 = vmul.f32 0.0009765625, %v1627_v50 }
 0x59a   : > { %v1332_v52 = vpop.f32.mrf.mxu0 }
 0x59b   : > { %v1444_v54 = vmul.f32 0.0009765625, %v1332_v52  ;;  %v1453_v6 = vmul.f32 %v1445_v60, %v1445_v60 }
 0x59d   : > { %v1452_v59 = vmul.f32 %v1444_v54, %v1444_v54 }
 0x5d2   : > { %v1634_v36 = vpop.f32.mrf.mxu1 }
 0x5d3   : > { %v1427_v40 = vmul.f32 %v1634_v36, %v1241_v28  ;;  %v1484_v28 = vld [vmem:[%s2053_s8 + $0x10] sm:$0xff] }
 0x5d4   : > { %v1407_v37 = vpop.f32.mrf.mxu1 }
 0x5d5   : > { %v1426_v38 = vmul.f32 %v1407_v37, %v1240_v31  ;;  %v1433_v45 = vsel %vm1214_vm8, %v1427_v40, 0.0  ;;  %v1485_v37 = vld [vmem:[%s2053_s8 + $0x18] sm:$0xff] }
 0x5d6   : > { %v1637_v39 = vpop.f32.mrf.mxu1 }
 0x5d7   : > { %v1430_v41 = vsel %vm1214_vm8, %v1426_v38, 0.0  ;;  %v1429_v44 = vmul.f32 %v1637_v39, %v1243_v35 }
 0x5d8   : > { %1431 = vadd.xlane.f32.xlu0 %v1430_v41  ;;  %v1417_v42 = vpop.f32.mrf.mxu1 }
 0x5d9   : > { %v1428_v43 = vmul.f32 %v1417_v42, %v1242_v34  ;;  %v1439_v47 = vsel %vm1214_vm8, %v1429_v44, 0.0 }
 0x5db   : > { %v1436_v46 = vsel %vm1214_vm8, %v1428_v43, 0.0 }
 0x5dc   : > { %1434 = vadd.xlane.f32.xlu0 %v1433_v45  ;;  %1437 = vadd.xlane.f32.xlu1 %v1436_v46 }
 0x5e0   : > { %1440 = vadd.xlane.f32.xlu1 %v1439_v47 }
 0x661   : > { %v1432_v55 = vpop.xlane.xlu0 %1431 }
 0x662   : > { %v1446_v57 = vmul.f32 0.0009765625, %v1432_v55 }
 0x664   : > { %v1454_v58 = vsub.f32 %v1446_v57, %v1450_v53 }
 0x665   : > { %v1435_v61 = vpop.xlane.xlu0 %1434  ;;  %v1438_v62 = vpop.xlane.xlu1 %1437 }
 0x666   : > { %v1458_v0 = vmax.f32 %v1454_v58, 0.0  ;;  %v1447_v1 = vmul.f32 0.0009765625, %v1435_v61  ;;  %v1448_v2 = vmul.f32 0.0009765625, %v1438_v62 }
 0x668   : > { %v1462_v3 = vadd.f32 1e-05, %v1458_v0  ;;  %v1455_v4 = vsub.f32 %v1447_v1, %v1451_v63  ;;  %v1456_v5 = vsub.f32 %v1448_v2, %v1452_v59 }
 0x669   : > { %v1441_v7 = vpop.xlane.xlu1 %1440 }
 0x66a   : > { %1692 = vrsqrt.f32 %v1462_v3  ;;  %v1459_v8 = vmax.f32 %v1455_v4, 0.0  ;;  %v1460_v9 = vmax.f32 %v1456_v5, 0.0  ;;  %v1449_v10 = vmul.f32 0.0009765625, %v1441_v7 }
 0x66c   : > { %v1463_v11 = vadd.f32 1e-05, %v1459_v8  ;;  %v1464_v12 = vadd.f32 1e-05, %v1460_v9  ;;  %v1457_v13 = vsub.f32 %v1449_v10, %v1453_v6 }
 0x66e   : > { %1694 = vrsqrt.f32 %v1463_v11  ;;  %v1461_v14 = vmax.f32 %v1457_v13, 0.0 }
 0x66f   : > { %1696 = vrsqrt.f32 %v1464_v12 }
 0x670   : > { %v1465_v15 = vadd.f32 1e-05, %v1461_v14 }
 0x672   : > { %1698 = vrsqrt.f32 %v1465_v15 }
 0x677   : > { %v1693_v17 = vpop.eup %1692 }
 0x678   : > { %v1474_v18 = vmul.f32 %v1693_v17, %v1470_v16 }
 0x67a   : > { %1478 = vst.msk [vmem:[%s2056_s11] sm:$0xff] %vm1231_vm7, %v1474_v18  ;;  %v1486_v21 = vmul.f32 %v1474_v18, %v1442_v51 }
 0x67b   : > { %v1695_v23 = vpop.eup %1694 }
 0x67c   : > { %v1697_v24 = vpop.eup %1696  ;;  %v1490_v25 = vsub.f32 %v1482_v19, %v1486_v21  ;;  %v1475_v26 = vmul.f32 %v1695_v23, %v1471_v20 }
 0x67d   : > { %v1476_v32 = vmul.f32 %v1697_v24, %v1472_v22 }
 0x67e   : > { %1494 = vst.msk [vmem:[%s2057_s12] sm:$0xff] %vm1231_vm7, %v1490_v25  ;;  %1479 = vst.msk [vmem:[%s2056_s11 + $0x8] sm:$0xff] %vm1231_vm7, %v1475_v26  ;;  %v1487_v31 = vmul.f32 %v1475_v26, %v1443_v56 }
 0x67f   : > { %v1699_v30 = vpop.eup %1698  ;;  %1480 = vst.msk [vmem:[%s2056_s11 + $0x10] sm:$0xff] %vm1231_vm7, %v1476_v32  ;;  %v1488_v33 = vmul.f32 %v1476_v32, %v1444_v54 }
 0x680   : > { %v1491_v34 = vsub.f32 %v1483_v27, %v1487_v31  ;;  %v1477_v35 = vmul.f32 %v1699_v30, %v1473_v29 }
 0x681   : > { %v1492_v36 = vsub.f32 %v1484_v28, %v1488_v33 }
 0x682   : > { %1495 = vst.msk [vmem:[%s2057_s12 + $0x8] sm:$0xff] %vm1231_vm7, %v1491_v34  ;;  %1481 = vst.msk [vmem:[%s2056_s11 + $0x18] sm:$0xff] %vm1231_vm7, %v1477_v35  ;;  %v1489_v38 = vmul.f32 %v1477_v35, %v1445_v60 }
 0x683   : > { %1496 = vst.msk [vmem:[%s2057_s12 + $0x10] sm:$0xff] %vm1231_vm7, %v1492_v36 }
 0x684   : > { %v1493_v39 = vsub.f32 %v1485_v37, %v1489_v38 }
 0x686   : > { %1497 = vst.msk [vmem:[%s2057_s12 + $0x18] sm:$0xff] %vm1231_vm7, %v1493_v39 }
 0x687 PF: > { %s23_s25 = sadd.s32 1, %s1738_s25   ;;  %s2058_s21 = smov %s1730_s23 }
 0x688   : > { %p20_p10 = scmp.ge.s32.totalorder %s23_s25, 6   ;;  %s2059_s22 = smov %s1734_s24 }
 0x689   : > { %s2060_s23 = smov %s2063_s26  ;;  %s2061_s24 = smov %s2067_s27 }
 0x68a   :  { %22 = sbr.rel (!%p20_p10) target bundleno = 3 (0x3), region = 130 }

</bundles_post_ra>
